<compile_context>
chip_gen: v5e
topology: v5e:2x2
jax: 0.10.0
libtpu: 0.0.40
codegen_flags: <defaults>
</compile_context>

<pallas_src>
import jax
import jax.numpy as jnp
from jax.experimental import pallas as pl
from jax.experimental.pallas import tpu as pltpu

INPUT_SIZE = 176
LAYER_SIZE = 20
N_LAYERS = 3
N_CLASSES = 13

# Packed-parameter slab layout (row starts are multiples of 8; 128 lanes).
_W0_OFF = 0                    # (176, 20) -> rows   0..175, cols 0..19
_W1_OFF = _W0_OFF + 176        # (128, 20) -> rows 176..303 (real rows 176..195)
_W2_OFF = _W1_OFF + 128        # (128, 20) -> rows 304..431 (real rows 304..323)
_WF_OFF = _W2_OFF + 128        # (128, 13) -> rows 432..559 (real rows 432..451)
_B_OFF = _WF_OFF + 128         # rows 560..563 = b0,b1,b2,bf ; 564..567 pad
SLAB_ROWS = _B_OFF + 8         # 568


def _pack_params(params):
    """Pack all weights/biases into one lane-dense, zero-padded f32 slab."""
    slab = jnp.zeros((SLAB_ROWS, 128), dtype=jnp.float32)
    slab = slab.at[_W0_OFF:_W0_OFF + INPUT_SIZE, :LAYER_SIZE].set(
        params['weight_0'].astype(jnp.float32))
    slab = slab.at[_W1_OFF:_W1_OFF + LAYER_SIZE, :LAYER_SIZE].set(
        params['weight_1'].astype(jnp.float32))
    slab = slab.at[_W2_OFF:_W2_OFF + LAYER_SIZE, :LAYER_SIZE].set(
        params['weight_2'].astype(jnp.float32))
    slab = slab.at[_WF_OFF:_WF_OFF + LAYER_SIZE, :N_CLASSES].set(
        params['final_weight'].astype(jnp.float32))
    slab = slab.at[_B_OFF + 0, :LAYER_SIZE].set(params['bias_0'].astype(jnp.float32))
    slab = slab.at[_B_OFF + 1, :LAYER_SIZE].set(params['bias_1'].astype(jnp.float32))
    slab = slab.at[_B_OFF + 2, :LAYER_SIZE].set(params['bias_2'].astype(jnp.float32))
    slab = slab.at[_B_OFF + 3, :N_CLASSES].set(params['final_bias'].astype(jnp.float32))
    return slab


def _mlp_ce_kernel(x_ref, y_ref, p_ref, psum_ref):
    """One batch tile: MLP forward + per-tile sum of NLL -> SMEM scalar."""
    x = x_ref[...]                       # (TM, 176) f32
    labels = y_ref[...]                  # (TM, 1)   i32

    # Static, (8,128)-aligned slices of the resident parameter slab.
    w0 = p_ref[pl.ds(_W0_OFF, INPUT_SIZE), :]   # (176, 128)
    w1 = p_ref[pl.ds(_W1_OFF, 128), :]          # (128, 128)
    w2 = p_ref[pl.ds(_W2_OFF, 128), :]          # (128, 128)
    wf = p_ref[pl.ds(_WF_OFF, 128), :]          # (128, 128)
    bias_blk = p_ref[pl.ds(_B_OFF, 8), :]       # (8, 128)
    b0 = bias_blk[0:1, :]
    b1 = bias_blk[1:2, :]
    b2 = bias_blk[2:3, :]
    bf = bias_blk[3:4, :]

    def sig(z):
        # sigmoid(z) == 0.5 * tanh(0.5 * z) + 0.5  (single EUP transcendental)
        return 0.5 * jnp.tanh(0.5 * z) + 0.5

    h = sig(jnp.dot(x, w0, preferred_element_type=jnp.float32) + b0)
    h = sig(jnp.dot(h, w1, preferred_element_type=jnp.float32) + b1)
    h = sig(jnp.dot(h, w2, preferred_element_type=jnp.float32) + b2)
    logits = jnp.dot(h, wf, preferred_element_type=jnp.float32) + bf   # (TM, 128)

    # Mask padded class columns (>= 13), then stable log-softmax.
    col = jax.lax.broadcasted_iota(jnp.int32, logits.shape, 1)
    logits = jnp.where(col < N_CLASSES, logits, jnp.float32(-1e30))

    m = jnp.max(logits, axis=-1, keepdims=True)
    shifted = logits - m
    lse = jnp.log(jnp.sum(jnp.exp(shifted), axis=-1, keepdims=True))
    log_probs = shifted - lse                                          # (TM, 128)

    # one-hot(labels) via iota compare (labels in [0, 13) -> only real cols hit)
    nll = jnp.where(col == labels, -log_probs, jnp.float32(0.0))       # (TM, 128)
    psum_ref[0, 0] = jnp.sum(nll)


def ksc_net_forward(x, labels, params, tile_m=None):
    """x: (B, 176) f32; labels: (B,) int; params: dict of weights/biases."""
    B = x.shape[0]
    if tile_m is None:
        tile_m = B if B <= 256 else 256
    assert B % tile_m == 0, "batch must be divisible by the row tile"
    n_tiles = B // tile_m

    slab = _pack_params(params)
    labels2d = labels.reshape(B, 1).astype(jnp.int32)

    partial = pl.pallas_call(
        _mlp_ce_kernel,
        out_shape=jax.ShapeDtypeStruct((n_tiles, 1), jnp.float32),
        grid_spec=pltpu.PrefetchScalarGridSpec(
            num_scalar_prefetch=0,
            grid=(n_tiles,),
            in_specs=[
                pl.BlockSpec((tile_m, INPUT_SIZE), lambda i: (i, 0)),
                pl.BlockSpec((tile_m, 1), lambda i: (i, 0)),
                # Parameter slab: same block every step -> stays resident in VMEM.
                pl.BlockSpec((SLAB_ROWS, 128), lambda i: (0, 0)),
            ],
            out_specs=pl.BlockSpec((1, 1), lambda i: (i, 0),
                                   memory_space=pltpu.MemorySpace.SMEM),
        ),
        compiler_params=pltpu.CompilerParams(
            dimension_semantics=("parallel",)),   # shards across v7x's 2 TCs
    )(x, labels2d, slab)

    # Mean reduction: static multiply instead of divide.
    return jnp.sum(partial) * jnp.float32(1.0 / B)


def init_params(key):
    """Deterministic init matching the module: weight_i ~ randn, bias_i = 0."""
    params = {}
    in_size = INPUT_SIZE
    keys = jax.random.split(key, N_LAYERS + 1)
    for i in range(N_LAYERS):
        params[f'weight_{i}'] = jax.random.normal(
            keys[i], (in_size, LAYER_SIZE), dtype=jnp.float32)
        params[f'bias_{i}'] = jnp.zeros((LAYER_SIZE,), dtype=jnp.float32)
        in_size = LAYER_SIZE
    params['final_weight'] = jax.random.normal(
        keys[N_LAYERS], (in_size, N_CLASSES), dtype=jnp.float32)
    params['final_bias'] = jnp.zeros((N_CLASSES,), dtype=jnp.float32)
    return params


def reference_forward(x, labels, params):
    """Pure-JAX reference for correctness check."""
    h = x
    for i in range(N_LAYERS):
        h = jax.nn.sigmoid(h @ params[f'weight_{i}'] + params[f'bias_{i}'])
    logits = h @ params['final_weight'] + params['final_bias']
    logp = jax.nn.log_softmax(logits, axis=-1)
    return -jnp.mean(jnp.take_along_axis(logp, labels[:, None], axis=-1))


if __name__ == "__main__":
    key = jax.random.PRNGKey(0)
    k_params, k_x, k_y = jax.random.split(key, 3)

    params = init_params(k_params)

    B = 8
    # TODO(synk): the PyTorch forward pulls (inp, out) from `loss.sample()`;
    # that data-loading step has no Pallas equivalent and is emulated with
    # deterministic random data here.
    x = jax.random.normal(k_x, (B, INPUT_SIZE), dtype=jnp.float32)
    labels = jax.random.randint(k_y, (B,), 0, N_CLASSES, dtype=jnp.int32)

    loss = ksc_net_forward(x, labels, params)
    loss = jax.block_until_ready(loss)

    ref = reference_forward(x, labels, params)
    assert jnp.allclose(loss, ref, rtol=1e-4, atol=1e-4), (loss, ref)

    print("KERNEL_OK")
</pallas_src>

<mosaic_0001>
module attributes {stable_mosaic.version = 11 : i64} {
  func.func @_mlp_ce_kernel(%arg0: i32, %arg1: memref<8x176xf32, #tpu.memory_space<vmem>>, %arg2: memref<8x1xi32, #tpu.memory_space<vmem>>, %arg3: memref<568x128xf32, #tpu.memory_space<vmem>>, %arg4: memref<1x1xf32, #tpu.memory_space<smem>>) attributes {dimension_semantics = [#tpu.dimension_semantics<parallel>], iteration_bounds = array<i64: 1>, scalar_prefetch = 0 : i64, scratch_operands = 0 : i64, tpu.core_type = #tpu.core_type<tc>, window_params = [{transform_indices = @transform_0, window_bounds = array<i64: 8, 176>}, {transform_indices = @transform_1, window_bounds = array<i64: 8, 1>}, {pipeline_mode = #tpu.pipeline_mode<synchronous>, transform_indices = @transform_2, window_bounds = array<i64: 568, 128>}, {transform_indices = @transform_3, window_bounds = array<i64: 1, 1>}]} {
    %c0 = arith.constant 0 : index
    %c0_0 = arith.constant 0 : index
    %0 = vector.load %arg1[%c0, %c0_0] : memref<8x176xf32, #tpu.memory_space<vmem>>, vector<8x176xf32>
    %c0_1 = arith.constant 0 : index
    %c0_2 = arith.constant 0 : index
    %1 = vector.load %arg2[%c0_1, %c0_2] : memref<8x1xi32, #tpu.memory_space<vmem>>, vector<8x1xi32>
    %c0_3 = arith.constant 0 : index
    %c0_4 = arith.constant 0 : index
    %2 = vector.load %arg3[%c0_3, %c0_4] : memref<568x128xf32, #tpu.memory_space<vmem>>, vector<176x128xf32>
    %c176 = arith.constant 176 : index
    %c0_5 = arith.constant 0 : index
    %3 = vector.load %arg3[%c176, %c0_5] : memref<568x128xf32, #tpu.memory_space<vmem>>, vector<128x128xf32>
    %c304 = arith.constant 304 : index
    %c0_6 = arith.constant 0 : index
    %4 = vector.load %arg3[%c304, %c0_6] : memref<568x128xf32, #tpu.memory_space<vmem>>, vector<128x128xf32>
    %c432 = arith.constant 432 : index
    %c0_7 = arith.constant 0 : index
    %5 = vector.load %arg3[%c432, %c0_7] : memref<568x128xf32, #tpu.memory_space<vmem>>, vector<128x128xf32>
    %c560 = arith.constant 560 : index
    %c0_8 = arith.constant 0 : index
    %6 = vector.load %arg3[%c560, %c0_8] : memref<568x128xf32, #tpu.memory_space<vmem>>, vector<8x128xf32>
    %7 = vector.extract_strided_slice %6 {offsets = [0, 0], sizes = [1, 128], strides = [1, 1]} : vector<8x128xf32> to vector<1x128xf32>
    %8 = vector.extract_strided_slice %6 {offsets = [1, 0], sizes = [1, 128], strides = [1, 1]} : vector<8x128xf32> to vector<1x128xf32>
    %9 = vector.extract_strided_slice %6 {offsets = [2, 0], sizes = [1, 128], strides = [1, 1]} : vector<8x128xf32> to vector<1x128xf32>
    %10 = vector.extract_strided_slice %6 {offsets = [3, 0], sizes = [1, 128], strides = [1, 1]} : vector<8x128xf32> to vector<1x128xf32>
    %cst = arith.constant dense<0.000000e+00> : vector<8x128xf32>
    %11 = tpu.matmul %0, %2, %cst {dimension_numbers = #tpu.dot_dimension_numbers<[1], [0], [0], [1], [0, 0, 1, 1], [], []>} : vector<8x176xf32>, vector<176x128xf32>, vector<8x128xf32> -> vector<8x128xf32>
    %12 = vector.broadcast %7 : vector<1x128xf32> to vector<8x128xf32>
    %13 = arith.addf %11, %12 : vector<8x128xf32>
    %cst_9 = arith.constant 5.000000e-01 : f32
    %14 = vector.broadcast %cst_9 : f32 to vector<8x128xf32>
    %15 = arith.mulf %14, %13 : vector<8x128xf32>
    %16 = math.tanh %15 : vector<8x128xf32>
    %cst_10 = arith.constant 5.000000e-01 : f32
    %17 = vector.broadcast %cst_10 : f32 to vector<8x128xf32>
    %18 = arith.mulf %17, %16 : vector<8x128xf32>
    %cst_11 = arith.constant 5.000000e-01 : f32
    %19 = vector.broadcast %cst_11 : f32 to vector<8x128xf32>
    %20 = arith.addf %18, %19 : vector<8x128xf32>
    %cst_12 = arith.constant dense<0.000000e+00> : vector<8x128xf32>
    %21 = tpu.matmul %20, %3, %cst_12 {dimension_numbers = #tpu.dot_dimension_numbers<[1], [0], [0], [1], [0, 0, 1, 1], [], []>} : vector<8x128xf32>, vector<128x128xf32>, vector<8x128xf32> -> vector<8x128xf32>
    %22 = vector.broadcast %8 : vector<1x128xf32> to vector<8x128xf32>
    %23 = arith.addf %21, %22 : vector<8x128xf32>
    %cst_13 = arith.constant 5.000000e-01 : f32
    %24 = vector.broadcast %cst_13 : f32 to vector<8x128xf32>
    %25 = arith.mulf %24, %23 : vector<8x128xf32>
    %26 = math.tanh %25 : vector<8x128xf32>
    %cst_14 = arith.constant 5.000000e-01 : f32
    %27 = vector.broadcast %cst_14 : f32 to vector<8x128xf32>
    %28 = arith.mulf %27, %26 : vector<8x128xf32>
    %cst_15 = arith.constant 5.000000e-01 : f32
    %29 = vector.broadcast %cst_15 : f32 to vector<8x128xf32>
    %30 = arith.addf %28, %29 : vector<8x128xf32>
    %cst_16 = arith.constant dense<0.000000e+00> : vector<8x128xf32>
    %31 = tpu.matmul %30, %4, %cst_16 {dimension_numbers = #tpu.dot_dimension_numbers<[1], [0], [0], [1], [0, 0, 1, 1], [], []>} : vector<8x128xf32>, vector<128x128xf32>, vector<8x128xf32> -> vector<8x128xf32>
    %32 = vector.broadcast %9 : vector<1x128xf32> to vector<8x128xf32>
    %33 = arith.addf %31, %32 : vector<8x128xf32>
    %cst_17 = arith.constant 5.000000e-01 : f32
    %34 = vector.broadcast %cst_17 : f32 to vector<8x128xf32>
    %35 = arith.mulf %34, %33 : vector<8x128xf32>
    %36 = math.tanh %35 : vector<8x128xf32>
    %cst_18 = arith.constant 5.000000e-01 : f32
    %37 = vector.broadcast %cst_18 : f32 to vector<8x128xf32>
    %38 = arith.mulf %37, %36 : vector<8x128xf32>
    %cst_19 = arith.constant 5.000000e-01 : f32
    %39 = vector.broadcast %cst_19 : f32 to vector<8x128xf32>
    %40 = arith.addf %38, %39 : vector<8x128xf32>
    %cst_20 = arith.constant dense<0.000000e+00> : vector<8x128xf32>
    %41 = tpu.matmul %40, %5, %cst_20 {dimension_numbers = #tpu.dot_dimension_numbers<[1], [0], [0], [1], [0, 0, 1, 1], [], []>} : vector<8x128xf32>, vector<128x128xf32>, vector<8x128xf32> -> vector<8x128xf32>
    %42 = vector.broadcast %10 : vector<1x128xf32> to vector<8x128xf32>
    %43 = arith.addf %41, %42 : vector<8x128xf32>
    %44 = tpu.iota {dimensions = array<i32: 1>} : vector<8x128xi32>
    %c13_i32 = arith.constant 13 : i32
    %45 = vector.broadcast %c13_i32 : i32 to vector<8x128xi32>
    %46 = arith.cmpi slt, %44, %45 : vector<8x128xi32>
    %cst_21 = arith.constant -1.000000e+30 : f32
    %47 = vector.broadcast %cst_21 : f32 to vector<8x128xf32>
    %48 = arith.select %46, %43, %47 : vector<8x128xi1>, vector<8x128xf32>
    %cst_22 = arith.constant dense<0xFF800000> : vector<8xf32>
    %49 = vector.multi_reduction <maximumf>, %48, %cst_22 [1] : vector<8x128xf32> to vector<8xf32>
    %50 = vector.shape_cast %49 : vector<8xf32> to vector<8x1xf32>
    %51 = vector.broadcast %50 : vector<8x1xf32> to vector<8x128xf32>
    %52 = arith.subf %48, %51 : vector<8x128xf32>
    %53 = math.exp %52 : vector<8x128xf32>
    %cst_23 = arith.constant dense<0.000000e+00> : vector<8xf32>
    %54 = vector.multi_reduction <add>, %53, %cst_23 [1] : vector<8x128xf32> to vector<8xf32>
    %55 = vector.shape_cast %54 : vector<8xf32> to vector<8x1xf32>
    %56 = math.log %55 : vector<8x1xf32>
    %57 = vector.broadcast %56 : vector<8x1xf32> to vector<8x128xf32>
    %58 = arith.subf %52, %57 : vector<8x128xf32>
    %59 = vector.broadcast %1 : vector<8x1xi32> to vector<8x128xi32>
    %60 = arith.cmpi eq, %44, %59 : vector<8x128xi32>
    %cst_24 = arith.constant 0.000000e+00 : f32
    %61 = vector.broadcast %cst_24 : f32 to vector<8x128xf32>
    %62 = arith.subf %61, %58 : vector<8x128xf32>
    %cst_25 = arith.constant 0.000000e+00 : f32
    %63 = vector.broadcast %cst_25 : f32 to vector<8x128xf32>
    %64 = arith.select %60, %62, %63 : vector<8x128xi1>, vector<8x128xf32>
    %65 = vector.shape_cast %64 : vector<8x128xf32> to vector<1x8x128xf32>
    %cst_26 = arith.constant dense<0.000000e+00> : vector<1xf32>
    %66 = vector.multi_reduction <add>, %65, %cst_26 [1, 2] : vector<1x8x128xf32> to vector<1xf32>
    %67 = vector.shape_cast %66 : vector<1xf32> to vector<1x1x1xf32>
    %68 = vector.extract %67[0, 0, 0] : f32 from vector<1x1x1xf32>
    %c0_27 = arith.constant 0 : index
    %c0_28 = arith.constant 0 : index
    %69 = memref.load %arg4[%c0_27, %c0_28] : memref<1x1xf32, #tpu.memory_space<smem>>
    memref.store %68, %arg4[%c0_27, %c0_28] : memref<1x1xf32, #tpu.memory_space<smem>>
    return
  }
  func.func @transform_0(%arg0: i32) -> (i32, i32) {
    %c0_i32 = arith.constant 0 : i32
    %c0_i32_0 = arith.constant 0 : i32
    return %arg0, %c0_i32 : i32, i32
  }
  func.func @transform_1(%arg0: i32) -> (i32, i32) {
    %c0_i32 = arith.constant 0 : i32
    %c0_i32_0 = arith.constant 0 : i32
    return %arg0, %c0_i32 : i32, i32
  }
  func.func @transform_2(%arg0: i32) -> (i32, i32) {
    %c0_i32 = arith.constant 0 : i32
    %c0_i32_0 = arith.constant 0 : i32
    %c0_i32_1 = arith.constant 0 : i32
    return %c0_i32, %c0_i32_0 : i32, i32
  }
  func.func @transform_3(%arg0: i32) -> (i32, i32) {
    %c0_i32 = arith.constant 0 : i32
    %c0_i32_0 = arith.constant 0 : i32
    return %arg0, %c0_i32 : i32, i32
  }
}

</mosaic_0001>

<bundles_post_ra>
// kernel: tpu_custom_call.1
= control target key start
LH: loop header
LB: loop body
LE: loop exit
PB: predicated region body
PF: predicated region fallthrough
CT: control target
= control target key end

     0   :  { %8 = vsyncpa [#allocation3], 0  ;;  %s418_s0 = inlined_call_operand.hbm [shape: f32[8,176], index: 0, kind: input, shape index: {}]   ;;  %s419_s1 = inlined_call_operand.vmem [shape: s32[8,1], index: 1, kind: input, shape index: {}]   ;;  %s420_s2 = inlined_call_operand.hbm [shape: f32[568,128], index: 2, kind: input, shape index: {}]   ;;  %s421_s3 = inlined_call_operand.hbm [shape: f32[1,1], index: 3, kind: output, shape index: {}]  }
   0x1   :  { %9 = vsyncpa [#allocation6], 0 }
   0x2   :  { %10 = vsyncpa [#allocation4], 0  ;;  %s16_s14 = sshll.u32 %s418_s0, 4  ;;  %s374_s15 = smov [#allocation2]   ;;  %s17_s14 = int_to_ptr.hbm [resolvable:$true] %s16_s14 }
   0x3   :  { %s18_s16 = sshll.u32 %s374_s15, 4  ;;  %s28_s19 = sshll.u32 %s420_s2, 4  ;;  %s19_s16 = int_to_ptr.vmem [resolvable:$true] %s18_s16  ;;  %s29_s19 = int_to_ptr.hbm [resolvable:$true] %s28_s19 }
   0x4   :  { %21 = dma.hbm_to_vmem [thread:$0]  %s17_s14, 256, %s19_s16, [#allocation3]  }
   0x5   :  { %s375_s20 = smov [#allocation5]   ;;  %s376_s22 = smov 128  }
   0x6   :  { %s30_s21 = sshll.u32 %s375_s20, 4  ;;  %s377_s23 = smov 8   ;;  %s31_s21 = int_to_ptr.vmem [resolvable:$true] %s30_s21 }
   0x7   :  { %36 = dma.hbm_to_vmem [thread:$0]  %s29_s19, 9088, %s31_s21, [#allocation6], %s376_s22, %s376_s22, %s377_s23  }
   0x8   :  { %368 = dma.done.wait [#allocation3], 256  }
   0x9   :  { %369 = vsyncadd [#allocation3], 4294967040 }
   0xa   :  { %370 = dma.done.wait [#allocation6], 9088  }
   0xb   :  { %371 = vsyncadd [#allocation6], 4294958208  ;;  %v63_v0 = vld [vmem:[#allocation5 + $0x78] sm:$0xff]  ;;  %v62_v1 = vld [vmem:[#allocation5 + $0x70] sm:$0xff]  ;;  %vm120_vm0 = vcmask 392192   ;;  %s275_s25 = sshll.u32 %s421_s3, 4  ;;  %s276_s25 = int_to_ptr.hbm [resolvable:$true] %s275_s25 }
   0xc   :  { %124 = vmatpush.msra.mxu0 %v63_v0  ;;  %v61_v2 = vld [vmem:[#allocation5 + $0x68] sm:$0xff]  ;;  %v60_v3 = vld [vmem:[#allocation5 + $0x60] sm:$0xff]  ;;  %v59_v6 = vld [vmem:[#allocation5 + $0x58] sm:$0xff]  ;;  %s379_s27 = smov [#allocation7]  }
   0xd   :  { %v69_v4 = vld [vmem:[#allocation5 + $0xa8] sm:$0xff]  ;;  %v68_v5 = vld [vmem:[#allocation5 + $0xa0] sm:$0xff]  ;;  %v67_v7 = vld [vmem:[#allocation5 + $0x98] sm:$0xff] }
   0xe   :  { %125 = vmatpush.msra.mxu0 %v62_v1  ;;  %154 = vmatpush.msra.mxu1 %v69_v4  ;;  %v58_v8 = vld [vmem:[#allocation5 + $0x50] sm:$0xff]  ;;  %v85_v10 = vld [vmem:[#allocation5 + $0x128] sm:$0xff]  ;;  %v84_v11 = vld [vmem:[#allocation5 + $0x120] sm:$0xff] }
   0xf   :  { %v66_v9 = vld [vmem:[#allocation5 + $0x90] sm:$0xff]  ;;  %v57_v12 = vld [vmem:[#allocation5 + $0x48] sm:$0xff]  ;;  %169 = vmatpush.msra.mxu2 %v85_v10  ;;  %v83_v14 = vld [vmem:[#allocation5 + $0x118] sm:$0xff] }
  0x10   :  { %126 = vmatpush.msra.mxu0 %v61_v2  ;;  %155 = vmatpush.msra.mxu1 %v68_v5  ;;  %v65_v13 = vld [vmem:[#allocation5 + $0x88] sm:$0xff]  ;;  %v56_v15 = vld [vmem:[#allocation5 + $0x40] sm:$0xff]  ;;  %v46_v17 = vld [vmem:[#allocation2 + $0x8] sm:$0xff] }
  0x11   :  { %v64_v16 = vld [vmem:[#allocation5 + $0x80] sm:$0xff]  ;;  %170 = vmatpush.msra.mxu2 %v84_v11  ;;  %v82_v18 = vld [vmem:[#allocation5 + $0x110] sm:$0xff]  ;;  %v55_v19 = vld [vmem:[#allocation5 + $0x38] sm:$0xff] }
  0x12   :  { %127 = vmatpush.msra.mxu0 %v60_v3  ;;  %156 = vmatpush.msra.mxu1 %v67_v7  ;;  %v81_v20 = vld [vmem:[#allocation5 + $0x108] sm:$0xff]  ;;  %v54_v21 = vld [vmem:[#allocation5 + $0x30] sm:$0xff]  ;;  %v80_v22 = vld [vmem:[#allocation5 + $0x100] sm:$0xff] }
  0x13   :  { %171 = vmatpush.msra.mxu2 %v83_v14  ;;  %v53_v23 = vld [vmem:[#allocation5 + $0x28] sm:$0xff]  ;;  %v79_v24 = vld [vmem:[#allocation5 + $0xf8] sm:$0xff]  ;;  %v52_v25 = vld [vmem:[#allocation5 + $0x20] sm:$0xff] }
  0x14   :  { %128 = vmatpush.msra.mxu0 %v59_v6  ;;  %157 = vmatpush.msra.mxu1 %v66_v9  ;;  %v51_v26 = vld [vmem:[#allocation5 + $0x18] sm:$0xff]  ;;  %v50_v27 = vld [vmem:[#allocation5 + $0x10] sm:$0xff]  ;;  %v49_v28 = vld [vmem:[#allocation5 + $0x8] sm:$0xff] }
  0x15   :  { %172 = vmatpush.msra.mxu2 %v82_v18  ;;  %v48_v29 = vld [vmem:[#allocation5] sm:$0xff]  ;;  %v45_v30 = vld [vmem:[#allocation2] sm:$0xff]  ;;  %v77_v32 = vld [vmem:[#allocation5 + $0xe8] sm:$0xff] }
  0x16   :  { %129 = vmatpush.msra.mxu0 %v58_v8  ;;  %158 = vmatpush.msra.mxu1 %v65_v13  ;;  %v78_v31 = vld [vmem:[#allocation5 + $0xf0] sm:$0xff]  ;;  %v76_v33 = vld [vmem:[#allocation5 + $0xe0] sm:$0xff]  ;;  %v75_v34 = vld [vmem:[#allocation5 + $0xd8] sm:$0xff] }
  0x17   :  { %173 = vmatpush.msra.mxu2 %v81_v20  ;;  %v74_v35 = vld [vmem:[#allocation5 + $0xd0] sm:$0xff]  ;;  %v73_v36 = vld [vmem:[#allocation5 + $0xc8] sm:$0xff]  ;;  %v72_v37 = vld [vmem:[#allocation5 + $0xc0] sm:$0xff] }
  0x18   :  { %130 = vmatpush.msra.mxu0 %v57_v12  ;;  %159 = vmatpush.msra.mxu1 %v64_v16  ;;  %v71_v38 = vld [vmem:[#allocation5 + $0xb8] sm:$0xff]  ;;  %v70_v39 = vld [vmem:[#allocation5 + $0xb0] sm:$0xff]  ;;  %v101_v40 = vld [vmem:[#allocation5 + $0x1a8] sm:$0xff] }
  0x19   :  { %287 = vmatmul.msk.f32.vlgmr.msra.gmra.mxu1 %vm120_vm0, %v46_v17  ;;  %174 = vmatpush.msra.mxu2 %v80_v22  ;;  %v100_v41 = vld [vmem:[#allocation5 + $0x1a0] sm:$0xff]  ;;  %v99_v42 = vld [vmem:[#allocation5 + $0x198] sm:$0xff]  ;;  %v98_v43 = vld [vmem:[#allocation5 + $0x190] sm:$0xff] }
  0x1a   :  { %131 = vmatpush.msra.mxu0 %v56_v15  ;;  %194 = vmatpush.msra.mxu3 %v101_v40  ;;  %v97_v44 = vld [vmem:[#allocation5 + $0x188] sm:$0xff]  ;;  %v406_v45 = vld [vmem:[#allocation5 + $0x230] sm:$0xff]  ;;  %v96_v46 = vld [vmem:[#allocation5 + $0x180] sm:$0xff] }
  0x1b   :  { %175 = vmatpush.msra.mxu2 %v79_v24  ;;  %v95_v47 = vld [vmem:[#allocation5 + $0x178] sm:$0xff]  ;;  %v119_v48 = vperm.slane %v406_v45, 0  ;;  %v94_v49 = vld [vmem:[#allocation5 + $0x170] sm:$0xff]  ;;  %v93_v58 = vld [vmem:[#allocation5 + $0x168] sm:$0xff]  ;;  %v168_v10 = vperm.slane %v406_v45, 1 }
  0x1c   :  { %132 = vmatpush.msra.mxu0 %v55_v19  ;;  %195 = vmatpush.msra.mxu3 %v100_v41  ;;  %v92_v59 = vld [vmem:[#allocation5 + $0x160] sm:$0xff]  ;;  %v91_v60 = vld [vmem:[#allocation5 + $0x158] sm:$0xff]  ;;  %v90_v61 = vld [vmem:[#allocation5 + $0x150] sm:$0xff] }
  0x1d   :  { %176 = vmatpush.msra.mxu2 %v78_v31  ;;  %v89_v62 = vld [vmem:[#allocation5 + $0x148] sm:$0xff]  ;;  %v88_v63 = vld [vmem:[#allocation5 + $0x140] sm:$0xff]  ;;  %v87_v0 = vld [vmem:[#allocation5 + $0x138] sm:$0xff] }
  0x1e   :  { %133 = vmatpush.msra.mxu0 %v54_v21  ;;  %196 = vmatpush.msra.mxu3 %v99_v42  ;;  %v86_v1 = vld [vmem:[#allocation5 + $0x130] sm:$0xff]  ;;  %v117_v2 = vld [vmem:[#allocation5 + $0x228] sm:$0xff]  ;;  %v116_v3 = vld [vmem:[#allocation5 + $0x220] sm:$0xff] }
  0x1f   :  { %177 = vmatpush.msra.mxu2 %v77_v32  ;;  %219 = vmatpush.msrb.mxu1 %v117_v2  ;;  %v115_v4 = vld [vmem:[#allocation5 + $0x218] sm:$0xff]  ;;  %v114_v5 = vld [vmem:[#allocation5 + $0x210] sm:$0xff]  ;;  %v113_v6 = vld [vmem:[#allocation5 + $0x208] sm:$0xff]  ;;  %v239_v32 = vlaneseq }
  0x20   :  { %134 = vmatpush.msra.mxu0 %v53_v23  ;;  %197 = vmatpush.msra.mxu3 %v98_v43  ;;  %v112_v7 = vld [vmem:[#allocation5 + $0x200] sm:$0xff]  ;;  %v111_v8 = vld [vmem:[#allocation5 + $0x1f8] sm:$0xff]  ;;  %v110_v9 = vld [vmem:[#allocation5 + $0x1f0] sm:$0xff] }
  0x21   :  { %178 = vmatpush.msra.mxu2 %v76_v33  ;;  %220 = vmatpush.msrb.mxu1 %v116_v3  ;;  %v109_v17 = vld [vmem:[#allocation5 + $0x1e8] sm:$0xff]  ;;  %v108_v18 = vld [vmem:[#allocation5 + $0x1e0] sm:$0xff]  ;;  %v107_v19 = vld [vmem:[#allocation5 + $0x1d8] sm:$0xff]  ;;  %v240_v33 = vand.u32 127, %v239_v32 }
  0x22   :  { %135 = vmatpush.msra.mxu0 %v52_v25  ;;  %198 = vmatpush.msra.mxu3 %v97_v44  ;;  %v106_v20 = vld [vmem:[#allocation5 + $0x1d0] sm:$0xff]  ;;  %v105_v21 = vld [vmem:[#allocation5 + $0x1c8] sm:$0xff]  ;;  %v104_v22 = vld [vmem:[#allocation5 + $0x1c0] sm:$0xff]  ;;  %v193_v25 = vperm.slane %v406_v45, 2 }
  0x23   :  { %179 = vmatpush.msra.mxu2 %v75_v34  ;;  %221 = vmatpush.msrb.mxu1 %v115_v4  ;;  %v103_v23 = vld [vmem:[#allocation5 + $0x1b8] sm:$0xff]  ;;  %v102_v24 = vld [vmem:[#allocation5 + $0x1b0] sm:$0xff]  ;;  %v218_v34 = vperm.slane %v406_v45, 3  ;;  %vm241_vm1 = vcmp.lt.s32.totalorder %v240_v33, 13 }
  0x24   :  { %136 = vmatpush.msra.mxu0 %v51_v26  ;;  %199 = vmatpush.msra.mxu3 %v96_v46 }
  0x25   :  { %180 = vmatpush.msra.mxu2 %v74_v35  ;;  %222 = vmatpush.msrb.mxu1 %v114_v5 }
  0x26   :  { %137 = vmatpush.msra.mxu0 %v50_v27  ;;  %200 = vmatpush.msra.mxu3 %v95_v47 }
  0x27   :  { %181 = vmatpush.msra.mxu2 %v73_v36  ;;  %223 = vmatpush.msrb.mxu1 %v113_v6 }
  0x28   :  { %138 = vmatpush.msra.mxu0 %v49_v28  ;;  %201 = vmatpush.msra.mxu3 %v94_v49 }
  0x29   :  { %182 = vmatpush.msra.mxu2 %v72_v37  ;;  %224 = vmatpush.msrb.mxu1 %v112_v7 }
  0x2a   :  { %139 = vmatpush.msra.mxu0 %v48_v29  ;;  %202 = vmatpush.msra.mxu3 %v93_v58 }
  0x2b   :  { %140 = vmatmul.f32.vlgmr.msra.gmra.mxu0 %v45_v30  ;;  %183 = vmatpush.msra.mxu2 %v71_v38  ;;  %v47_v38 = vld [vmem:[%s419_s1] sm:$0xff] }
  0x2c   :  { %203 = vmatpush.msra.mxu3 %v92_v59  ;;  %225 = vmatpush.msrb.mxu1 %v111_v8 }
  0x2d   :  { %184 = vmatpush.msra.mxu2 %v70_v39  ;;  %v378_v39 = vmov 0  }
  0x2e   :  { %204 = vmatpush.msra.mxu3 %v91_v60  ;;  %226 = vmatpush.msrb.mxu1 %v110_v9 }
  0x2f   :  { %296 = vset.pattern.permute.xlu1 %v378_v39  ;;  %297 = vset.pattern.permute.xlu0 %v378_v39 }
  0x30   :  { %205 = vmatpush.msra.mxu3 %v90_v61  ;;  %227 = vmatpush.msrb.mxu1 %v109_v17 }
  0x31   :  { %254 = vperm.xlu1 %296, %v47_v38  }
  0x32   :  { %206 = vmatpush.msra.mxu3 %v89_v62  ;;  %228 = vmatpush.msrb.mxu1 %v108_v18 }
  0x34   :  { %207 = vmatpush.msra.mxu3 %v88_v63  ;;  %229 = vmatpush.msrb.mxu1 %v107_v19 }
  0x36   :  { %208 = vmatpush.msra.mxu3 %v87_v0  ;;  %230 = vmatpush.msrb.mxu1 %v106_v20 }
  0x38   :  { %209 = vmatpush.msra.mxu3 %v86_v1  ;;  %231 = vmatpush.msrb.mxu1 %v105_v21 }
  0x3a   :  { %232 = vmatpush.msrb.mxu1 %v104_v22 }
  0x3c   :  { %233 = vmatpush.msrb.mxu1 %v103_v23 }
  0x3e   :  { %234 = vmatpush.msrb.mxu1 %v102_v24 }
  0x96   :  { %v161_v51 = vpop.f32.mrf.mxu1 }
  0xa3   :  { %v255_v47 = vpop.permute.xlu1 %254 }
  0xa4   :  { %vm256_vm2 = vcmp.eq.s32.totalorder %v240_v33, %v255_v47 }
  0xa8   :  { %v141_v50 = vpop.f32.mrf.mxu0 }
  0xa9   :  { %v142_v52 = vadd.f32 %v141_v50, %v119_v48 }
  0xab   :  { %v162_v53 = vadd.f32 %v161_v51, %v142_v52 }
  0xad   :  { %v164_v54 = vmul.f32 0.5, %v162_v53 }
  0xaf   :  { %298 = vtanh.f32 %v164_v54 }
  0xb5   :  { %v299_v55 = vpop.eup %298 }
  0xb6   :  { %v166_v56 = vmul.f32 0.5, %v299_v55 }
  0xb8   :  { %v167_v57 = vadd.f32 0.5, %v166_v56 }
  0xba   :  { %185 = vmatmul.f32.vlgmr.msra.gmra.mxu2 %v167_v57 }
 0x13d   :  { %v186_v11 = vpop.f32.mrf.mxu2 }
 0x13e   :  { %v187_v12 = vadd.f32 %v186_v11, %v168_v10 }
 0x140   :  { %v189_v13 = vmul.f32 0.5, %v187_v12 }
 0x142   :  { %300 = vtanh.f32 %v189_v13 }
 0x148   :  { %v301_v14 = vpop.eup %300 }
 0x149   :  { %v191_v15 = vmul.f32 0.5, %v301_v14 }
 0x14b   :  { %v192_v16 = vadd.f32 0.5, %v191_v15 }
 0x14d   :  { %210 = vmatmul.f32.vlgmr.msra.gmra.mxu3 %v192_v16 }
 0x1d0   :  { %v211_v26 = vpop.f32.mrf.mxu3 }
 0x1d1   :  { %v212_v27 = vadd.f32 %v211_v26, %v193_v25 }
 0x1d3   :  { %v214_v28 = vmul.f32 0.5, %v212_v27 }
 0x1d5   :  { %302 = vtanh.f32 %v214_v28 }
 0x1db   :  { %v303_v29 = vpop.eup %302 }
 0x1dc   :  { %v216_v30 = vmul.f32 0.5, %v303_v29 }
 0x1de   :  { %v217_v31 = vadd.f32 0.5, %v216_v30 }
 0x1e0   :  { %235 = vmatmul.f32.vlgmr.msrb.gmra.mxu1 %v217_v31 }
 0x25d   :  { %v236_v35 = vpop.f32.mrf.mxu1 }
 0x25e   :  { %v237_v36 = vadd.f32 %v236_v35, %v218_v34 }
 0x260   :  { %v242_v37 = vsel %vm241_vm1, %v237_v36, -1e+30 }
 0x261   :  { %243 = vmax.xlane.f32.xlu0 %v242_v37 }
 0x2d4   :  { %v244_v40 = vpop.xlane.xlu0 %243 }
 0x2d5   :  { %v245_v41 = vsub.f32 %v242_v37, %v244_v40 }
 0x2d7   :  { %v246_v42 = vmul.f32 1.442695, %v245_v41 }
 0x2d9   :  { %304 = vpow2.f32 %v246_v42 }
 0x2df   :  { %v305_v43 = vpop.eup %304 }
 0x2e0   :  { %248 = vadd.xlane.f32.xlu0 %v305_v43 }
 0x353   :  { %v249_v44 = vpop.xlane.xlu0 %248 }
 0x354   :  { %306 = vlog2.f32 %v249_v44 }
 0x35a   :  { %v307_v45 = vpop.eup %306 }
 0x35b   :  { %v251_v46 = vmul.f32 0.6931472, %v307_v45 }
 0x35d   :  { %v252_v48 = vsub.f32 %v245_v41, %v251_v46 }
 0x35f   :  { %v257_v49 = vsub.f32 0.0, %v252_v48 }
 0x361   :  { %v258_v50 = vsel %vm256_vm2, %v257_v49, 0.0 }
 0x362   :  { %259 = vadd.xlane.f32.xlu1 %v258_v50 }
 0x3d5   :  { %v260_v51 = vpop.xlane.xlu1 %259 }
 0x3d6   :  { %v261_v52 = vrot.slane %v260_v51, 4 }
 0x3d8   :  { %v262_v53 = vadd.f32 %v261_v52, %v260_v51 }
 0x3da   :  { %v263_v54 = vrot.slane %v262_v53, 2 }
 0x3dc   :  { %v264_v55 = vadd.f32 %v263_v54, %v262_v53 }
 0x3de   :  { %v265_v56 = vrot.slane %v264_v55, 1 }
 0x3e0   :  { %v266_v57 = vadd.f32 %v265_v56, %v264_v55 }
 0x3e2   :  { %288 = vpush %v266_v57 }
 0x413   :  { %s289_s26 = spop %288 }
 0x414   :  { %269 = sst [smem:[#allocation7]] %s289_s26 }
 0x415   :  { %278 = dma.smem_to_hbm %s379_s27, 16, %s276_s25, [#allocation4]  }
 0x416   :  { %372 = dma.done.wait [#allocation4], 16  }
 0x417   :  { %373 = vsyncadd [#allocation4], 4294967280 }
 0x418   :  { %283 = sfence }
 0x419   :  { %284 = vsyncpa [#allocation3], 1 }
 0x41a   :  { %285 = vsyncpa [#allocation6], 1 }
 0x41b   :  { %286 = vsyncpa [#allocation4], 1 }

</bundles_post_ra>
